<compile_context>
chip_gen: v6e
topology: v6e:2x2x1
jax: 0.10.0
libtpu: 0.0.40
codegen_flags: <defaults>
</compile_context>

<pallas_src>
import functools

import jax
import jax.numpy as jnp
from jax.experimental import pallas as pl
from jax.experimental.pallas import tpu as pltpu


def _layernorm_kernel(x_ref, a_ref, b_ref, o_ref, *, eps, features, padded):
    x = x_ref[...].astype(jnp.float32)                          # (TR, Dp)

    if padded != features:
        # Mask padded lanes out of the reductions (exact, no cancellation).
        lane = jax.lax.broadcasted_iota(jnp.int32, x.shape, dimension=1)
        valid = lane < features
        x = jnp.where(valid, x, 0.0)                            # pads are 0 in HBM too

    mean = jnp.sum(x, axis=-1, keepdims=True) * (1.0 / features)   # (TR, 1)

    diff_sq = (x - mean) * (x - mean)
    if padded != features:
        diff_sq = jnp.where(valid, diff_sq, 0.0)
    # torch.Tensor.std is unbiased: divide by (D - 1).  (features==1 guarded.)
    var = jnp.sum(diff_sq, axis=-1, keepdims=True) * (1.0 / max(features - 1, 1))
    inv = 1.0 / (jnp.sqrt(var) + eps)                           # (TR, 1) exact

    gamma = a_ref[...].astype(jnp.float32)                      # (1, Dp)
    beta = b_ref[...].astype(jnp.float32)                       # (1, Dp)
    # Recompute (x - mean) here rather than keeping a `centered` tile live
    # across both the reduction and the store (cuts f32 spill pressure).
    o_ref[...] = (gamma * ((x - mean) * inv) + beta).astype(o_ref.dtype)


def layer_norm(x, a_2, b_2, eps=1e-6, max_tile_rows=1024):
    """Pallas implementation of LayerNorm.forward (last-dim normalization)."""
    D = x.shape[-1]
    orig_shape = x.shape
    x2d = x.reshape(-1, D)            # keep native dtype; widen inside kernel
    N = x2d.shape[0]

    # --- Lane-dense feature dim: pad D to a multiple of 128 (unmasked vst). ---
    LANES = 128
    Dp = ((D + LANES - 1) // LANES) * LANES
    if Dp != D:
        x2d = jnp.pad(x2d, ((0, 0), (0, Dp - D)))
        a2d = jnp.pad(a_2.reshape(1, D), ((0, 0), (0, Dp - D)))
        b2d = jnp.pad(b_2.reshape(1, D), ((0, 0), (0, Dp - D)))
    else:
        a2d = a_2.reshape(1, D)
        b2d = b_2.reshape(1, D)

    # --- Dtype- and generation-aware VMEM budget. ---
    in_bytes = jnp.dtype(x2d.dtype).itemsize
    out_bytes = in_bytes
    # Per-row footprint: double-buffered input + output tiles, plus ~2 full
    # f32 temporaries (widened x and one transient) the compiler may keep.
    per_row_bytes = Dp * (2 * in_bytes + 2 * out_bytes + 2 * 4)

    try:
        vmem_cap = int(pltpu.get_tpu_info().vmem_capacity_bytes)
    except Exception:
        vmem_cap = 64 * 1024 * 1024   # conservative (v7x-sized) fallback
    # ~24 MiB on v5e/v6e (128 MiB VMEM), ~12.8 MiB on v7x (64 MiB VMEM).
    budget = max(8 * 1024 * 1024, min(24 * 1024 * 1024, vmem_cap // 5))

    max_rows_by_vmem = max(8, budget // per_row_bytes)
    tr = min(max_tile_rows, N, max_rows_by_vmem)

    # --- Megacore: guarantee >= 2 grid steps (>= 8 when N is large enough). ---
    if N >= 16:
        target_steps = 8 if N >= 64 else 2
        rows_per_step = pl.cdiv(N, target_steps)
        tr = min(tr, max(8, pl.cdiv(rows_per_step, 8) * 8))

    if tr < N:
        tr = max(8, (tr // 8) * 8)    # (8, 128) sublane constraint on row tiles
    grid = (pl.cdiv(N, tr),)

    # vmem_limit consistent with the chosen tile (headroom for params/spill).
    footprint = tr * per_row_bytes + 4 * Dp * 4
    vmem_limit = int(min(vmem_cap // 2,
                         max(footprint + footprint // 2, 16 * 1024 * 1024)))

    kernel = functools.partial(_layernorm_kernel, eps=float(eps),
                               features=D, padded=Dp)

    out = pl.pallas_call(
        kernel,
        out_shape=jax.ShapeDtypeStruct((N, Dp), x.dtype),
        grid_spec=pltpu.PrefetchScalarGridSpec(
            num_scalar_prefetch=0,
            grid=grid,
            in_specs=[
                pl.BlockSpec((tr, Dp), lambda i: (i, 0)),   # x rows
                pl.BlockSpec((1, Dp), lambda i: (0, 0)),    # gamma (resident)
                pl.BlockSpec((1, Dp), lambda i: (0, 0)),    # beta  (resident)
            ],
            out_specs=pl.BlockSpec((tr, Dp), lambda i: (i, 0)),
        ),
        compiler_params=pltpu.CompilerParams(
            dimension_semantics=("parallel",),   # rows independent -> megacore
            vmem_limit_bytes=vmem_limit,
        ),
    )(x2d, a2d, b2d)

    if Dp != D:
        out = out[:, :D]
    return out.reshape(orig_shape)


def _reference_layer_norm(x, a_2, b_2, eps):
    """Pure-JAX reference matching the PyTorch forward (unbiased std)."""
    D = x.shape[-1]
    x32 = x.astype(jnp.float32)
    mean = jnp.mean(x32, axis=-1, keepdims=True)
    std = jnp.sqrt(jnp.sum((x32 - mean) ** 2, axis=-1, keepdims=True) / (D - 1))
    return (a_2.astype(jnp.float32) * (x32 - mean) / (std + eps)
            + b_2.astype(jnp.float32)).astype(x.dtype)


if __name__ == "__main__":
    key = jax.random.PRNGKey(0)
    k1, k2, k3 = jax.random.split(key, 3)

    B, T, D = 2, 8, 32          # batch=2, seq=8, hidden=32
    eps = 1e-6

    x = jax.random.normal(k1, (B, T, D), dtype=jnp.float32)
    # Module initializes a_2=ones, b_2=zeros; perturb so the affine path is tested.
    a_2 = jnp.ones((D,), jnp.float32) + 0.1 * jax.random.normal(k2, (D,), jnp.float32)
    b_2 = 0.1 * jax.random.normal(k3, (D,), jnp.float32)

    y = layer_norm(x, a_2, b_2, eps=eps)
    y = jax.block_until_ready(y)

    ref = _reference_layer_norm(x, a_2, b_2, eps)
    assert y.shape == x.shape
    assert bool(jnp.all(jnp.isfinite(y))), "kernel produced non-finite output"
    assert jnp.allclose(y, ref, rtol=1e-5, atol=1e-5), (
        float(jnp.max(jnp.abs(y - ref))))

    print("KERNEL_OK")
</pallas_src>

<mosaic_0001>
module attributes {stable_mosaic.version = 11 : i64} {
  func.func @_layernorm_kernel(%arg0: i32, %arg1: memref<8x128xf32, #tpu.memory_space<vmem>>, %arg2: memref<1x128xf32, #tpu.memory_space<vmem>>, %arg3: memref<1x128xf32, #tpu.memory_space<vmem>>, %arg4: memref<8x128xf32, #tpu.memory_space<vmem>>) attributes {dimension_semantics = [#tpu.dimension_semantics<parallel>], iteration_bounds = array<i64: 2>, scalar_prefetch = 0 : i64, scratch_operands = 0 : i64, tpu.core_type = #tpu.core_type<tc>, window_params = [{transform_indices = @transform_0, window_bounds = array<i64: 8, 128>}, {pipeline_mode = #tpu.pipeline_mode<synchronous>, transform_indices = @transform_1, window_bounds = array<i64: 1, 128>}, {pipeline_mode = #tpu.pipeline_mode<synchronous>, transform_indices = @transform_2, window_bounds = array<i64: 1, 128>}, {transform_indices = @transform_3, window_bounds = array<i64: 8, 128>}]} {
    %c0 = arith.constant 0 : index
    %c0_0 = arith.constant 0 : index
    %0 = vector.load %arg1[%c0, %c0_0] : memref<8x128xf32, #tpu.memory_space<vmem>>, vector<8x128xf32>
    %1 = tpu.iota {dimensions = array<i32: 1>} : vector<8x128xi32>
    %c32_i32 = arith.constant 32 : i32
    %2 = vector.broadcast %c32_i32 : i32 to vector<8x128xi32>
    %3 = arith.cmpi slt, %1, %2 : vector<8x128xi32>
    %cst = arith.constant 0.000000e+00 : f32
    %4 = vector.broadcast %cst : f32 to vector<8x128xf32>
    %5 = arith.select %3, %0, %4 : vector<8x128xi1>, vector<8x128xf32>
    %cst_1 = arith.constant dense<0.000000e+00> : vector<8xf32>
    %6 = vector.multi_reduction <add>, %5, %cst_1 [1] : vector<8x128xf32> to vector<8xf32>
    %7 = vector.shape_cast %6 : vector<8xf32> to vector<8x1xf32>
    %cst_2 = arith.constant 3.125000e-02 : f32
    %8 = vector.broadcast %cst_2 : f32 to vector<8x1xf32>
    %9 = arith.mulf %7, %8 : vector<8x1xf32>
    %10 = vector.broadcast %9 : vector<8x1xf32> to vector<8x128xf32>
    %11 = arith.subf %5, %10 : vector<8x128xf32>
    %12 = vector.broadcast %9 : vector<8x1xf32> to vector<8x128xf32>
    %13 = arith.subf %5, %12 : vector<8x128xf32>
    %14 = arith.mulf %11, %13 : vector<8x128xf32>
    %cst_3 = arith.constant 0.000000e+00 : f32
    %15 = vector.broadcast %cst_3 : f32 to vector<8x128xf32>
    %16 = arith.select %3, %14, %15 : vector<8x128xi1>, vector<8x128xf32>
    %cst_4 = arith.constant dense<0.000000e+00> : vector<8xf32>
    %17 = vector.multi_reduction <add>, %16, %cst_4 [1] : vector<8x128xf32> to vector<8xf32>
    %18 = vector.shape_cast %17 : vector<8xf32> to vector<8x1xf32>
    %cst_5 = arith.constant 0.0322580636 : f32
    %19 = vector.broadcast %cst_5 : f32 to vector<8x1xf32>
    %20 = arith.mulf %18, %19 : vector<8x1xf32>
    %21 = math.sqrt %20 : vector<8x1xf32>
    %cst_6 = arith.constant 9.99999997E-7 : f32
    %22 = vector.broadcast %cst_6 : f32 to vector<8x1xf32>
    %23 = arith.addf %21, %22 : vector<8x1xf32>
    %cst_7 = arith.constant 1.000000e+00 : f32
    %24 = vector.broadcast %cst_7 : f32 to vector<8x1xf32>
    %25 = arith.divf %24, %23 : vector<8x1xf32>
    %c0_8 = arith.constant 0 : index
    %c0_9 = arith.constant 0 : index
    %26 = vector.load %arg2[%c0_8, %c0_9] : memref<1x128xf32, #tpu.memory_space<vmem>>, vector<1x128xf32>
    %c0_10 = arith.constant 0 : index
    %c0_11 = arith.constant 0 : index
    %27 = vector.load %arg3[%c0_10, %c0_11] : memref<1x128xf32, #tpu.memory_space<vmem>>, vector<1x128xf32>
    %28 = vector.broadcast %9 : vector<8x1xf32> to vector<8x128xf32>
    %29 = arith.subf %5, %28 : vector<8x128xf32>
    %30 = vector.broadcast %25 : vector<8x1xf32> to vector<8x128xf32>
    %31 = arith.mulf %29, %30 : vector<8x128xf32>
    %32 = vector.broadcast %26 : vector<1x128xf32> to vector<8x128xf32>
    %33 = arith.mulf %32, %31 : vector<8x128xf32>
    %34 = vector.broadcast %27 : vector<1x128xf32> to vector<8x128xf32>
    %35 = arith.addf %33, %34 : vector<8x128xf32>
    %c0_12 = arith.constant 0 : index
    %c0_13 = arith.constant 0 : index
    %36 = vector.load %arg4[%c0_12, %c0_13] : memref<8x128xf32, #tpu.memory_space<vmem>>, vector<8x128xf32>
    tpu.vector_store %arg4[%c0_12, %c0_13], %35 {strides = array<i32>} : memref<8x128xf32, #tpu.memory_space<vmem>>, vector<8x128xf32>,
    return
  }
  func.func @transform_0(%arg0: i32) -> (i32, i32) {
    %c0_i32 = arith.constant 0 : i32
    %c0_i32_0 = arith.constant 0 : i32
    return %arg0, %c0_i32 : i32, i32
  }
  func.func @transform_1(%arg0: i32) -> (i32, i32) {
    %c0_i32 = arith.constant 0 : i32
    %c0_i32_0 = arith.constant 0 : i32
    %c0_i32_1 = arith.constant 0 : i32
    return %c0_i32, %c0_i32_0 : i32, i32
  }
  func.func @transform_2(%arg0: i32) -> (i32, i32) {
    %c0_i32 = arith.constant 0 : i32
    %c0_i32_0 = arith.constant 0 : i32
    %c0_i32_1 = arith.constant 0 : i32
    return %c0_i32, %c0_i32_0 : i32, i32
  }
  func.func @transform_3(%arg0: i32) -> (i32, i32) {
    %c0_i32 = arith.constant 0 : i32
    %c0_i32_0 = arith.constant 0 : i32
    return %arg0, %c0_i32 : i32, i32
  }
}

</mosaic_0001>

<bundles_post_ra>
// kernel: tpu_custom_call.1
= control target key start
LH: loop header
LB: loop body
LE: loop exit
PB: predicated region body
PF: predicated region fallthrough
CT: control target
= control target key end

     0   :  { %8 = vsyncpa [#allocation3], 0  ;;  %s643_s0 = inlined_call_operand.hbm [shape: f32[16,128], index: 0, kind: input, shape index: {}]   ;;  %s644_s1 = inlined_call_operand.vmem [shape: f32[1,128], index: 1, kind: input, shape index: {}]   ;;  %s645_s2 = inlined_call_operand.vmem [shape: f32[1,128], index: 2, kind: input, shape index: {}]   ;;  %s646_s3 = inlined_call_operand.hbm [shape: f32[16,128], index: 3, kind: output, shape index: {}]  }
   0x1   :  { %10 = vsyncpa [#allocation3 + $0x1], 0 }
   0x2   :  { %11 = vsyncpa [#allocation4], 0 }
   0x3   :  { %13 = vsyncpa [#allocation4 + $0x1], 0  ;;  %s492_s12 = smov 0   ;;  %s494_s13 = smov 0  }
   0x4   :  { %s496_s14 = smov 0   ;;  %s498_s15 = smov 0  }
   0x5 LB: > { %s513_s16 = sadd.s32 4294967295, %s468_s15   ;;  %s312_s17 = sadd.s32 4294967294, %s468_s15   ;;  %s468_s15 = sphi %s498_s15, %s663_s15   ;;  %s464_s14 = sphi %s496_s14, %s662_s14   ;;  %s460_s13 = sphi %s494_s13, %s661_s13   ;;  %s456_s12 = sphi %s492_s12, %s660_s12  }
   0x6   : > { %s517_s18 = sadd.s32 1, %s468_s15   ;;  %s26_s19 = sadd.s32 1, %s464_s14 }
   0x7   : > { %s23_s20 = ssub.s32 %s468_s15, %s517_s18  ;;  %p33_p0 = scmp.ne.s32.totalorder %s464_s14, %s460_s13 }
   0x8   : > { %p24_p1 = scmp.eq.s32.totalorder %s23_s20, 0  ;;  %p34_p2 = scmp.eq.s32.totalorder %s468_s15, 0 }
   0x9   : > { %p39_p3 = scmp.ne.s32.totalorder %s460_s13, %s456_s12  ;;  %p40_p4 = scmp.eq.s32.totalorder %s513_s16, 0 }
   0xa   : > { %s529_s21 = scalar_select %p24_p1, %s464_s14, %s26_s19  }
   0xb   : > { %p531_p5 = por %p34_p2, %p33_p0  ;;  %p535_p6 = por %p40_p4, %p39_p3 }
   0xc   : > { %p105_p7 = scmp.eq.s32.totalorder %s513_s16, 1  ;;  %p111_p8 = scmp.eq.s32.totalorder %s312_s17, 1 }
   0xd   : > { %s650_s23 = scalar_select %p535_p6, 1, 0 }
   0xe   : > { %p338_p10 = scmp.lt.s32.totalorder %s468_s15, 2  ;;  %p542_p11 = por %p105_p7, %p33_p0 }
   0xf   : > { %p546_p12 = por %p111_p8, %p39_p3  ;;  %s137_s26 = sand.u32 1, %s464_s14  }
  0x10   : > { %s651_s24 = scalar_select %p542_p11, 1, 0 }
  0x11   : > { %s652_s25 = scalar_select %p546_p12, 1, 0 }
  0x12   : > { %s316_s27 = sshll.u32 %s468_s15, 7  ;;  %s315_s28 = sshll.u32 %s137_s26, 3 }
  0x13   : > { %s555_s4 = scalar_lea.hbm %s643_s0, %s316_s27  ;;  %s141_s5 = scalar_lea.vmem [#allocation2], %s315_s28 }
  0x14   : > { %s148_s6 = sshll.u32 %s141_s5, 4  ;;  %p559_p13 = pnand %p338_p10, %p531_p5  ;;  %s563_s6 = int_to_ptr.vmem [resolvable:$true] %s148_s6 }
  0x15   : > { %s138_s8 = scalar_lea.sflag [#allocation3], %s137_s26  ;;  %s376_s9 = scalar_lea.hbm %s555_s4, 128 }
  0x16   : > { %p377_p2 = scmp.ne.s32.totalorder %s555_s4, %s376_s9  ;;  %p378_p3 = pneg %p559_p13 }
  0x17   : > { %s381_s17 = scalar_lea.hbm %s643_s0, 256  ;;  %p382_p5 = scmp.lt.s32.totalorder %s555_s4, %s643_s0 }
  0x18   : > { %p379_p4 = pnand %p378_p3, %p377_p2  ;;  %p383_p8 = scmp.lt.s32.totalorder %s381_s17, %s376_s9 }
  0x1a   : > { %p380_p7 = pneg %p379_p4  ;;  %p384_p10 = por %p383_p8, %p382_p5 }
  0x1c   : > { %p385_p9 = pnand %p384_p10, %p380_p7 }
  0x1e   : > { %388 = shalt.err (!%p385_p9)
}
  0x1f   : > { %s389_s22 = scalar_lea.vmem %s563_s6, 128  ;;  %s470_s26 = smov [#allocation2]  }
  0x20   : > { %p390_p0 = scmp.ne.s32.totalorder %s563_s6, %s389_s22  ;;  %s394_s27 = sshll.u32 %s470_s26, 4  ;;  %s395_s27 = int_to_ptr.vmem [resolvable:$false] %s394_s27 }
  0x21   : > { %s396_s28 = scalar_lea.vmem %s395_s27, 256  ;;  %p397_p4 = scmp.lt.s32.totalorder %s563_s6, %s395_s27 }
  0x22   : > { %p392_p1 = pnand %p390_p0, %p378_p3  ;;  %p398_p12 = scmp.lt.s32.totalorder %s396_s28, %s389_s22 }
  0x24   : > { %p393_p2 = pneg %p392_p1  ;;  %p399_p11 = por %p398_p12, %p397_p4 }
  0x26   : > { %p400_p6 = pnand %p399_p11, %p393_p2 }
  0x28   : > { %403 = shalt.err (!%p400_p6)
}
  0x29   : > { %333 = dma.hbm_to_vmem [thread:$0]  (!%p559_p13), %s555_s4, 128, %s563_s6, %s138_s8  }
  0x2a   : > { %p654_p9 = scmp.lt.s32.totalorder %s468_s15, 3  ;;  %p655_p7 = scmp.ge.s32.totalorder %s468_s15, 1 }
  0x2c   : > { %p154_p0 = pnand %p655_p7, %p654_p9 }
  0x2d   : > { %s590_s29 = sand.u32 (!%p154_p0), 1, %s460_s13   ;;  %p656_p6 = scmp.ne.s32.totalorder (!%p154_p0), %s650_s23, 0 }
  0x2e   : > { %157 = sbr.rel (%p154_p0) target bundleno = 396 (0x18c), region = 32  ;;  %s318_s30 = sshll.u32 (!%p154_p0), %s590_s29, 3 }
  0x2f   : > { %s160_s5 = scalar_lea.sflag (!%p154_p0), [#allocation3], %s590_s29  ;;  %s163_s7 = scalar_lea.vmem (!%p154_p0), [#allocation2], %s318_s30 }
  0x33   : > { %447 = dma.done.wait (%p656_p6), %s160_s5, 128  }
  0x34   : > { %449 = vsyncadd (%p656_p6), %s160_s5, 4294967168  ;;  %v187_v0 = vlaneseq  ;;  %v186_v2 = vld [vmem:[%s163_s7] sm:$0xff]  ;;  %s323_s9 = sshll.u32 %s513_s16, 7  ;;  %s185_s10 = scalar_lea.vmem [#allocation5], %s318_s30 }
  0x35   : > { %v320_v18 = vld [vmem:[%s644_s1] ss:$0 sm:$0xff]  ;;  %s242_s11 = sshll.u32 %s185_s10, 4  ;;  %s240_s20 = scalar_lea.hbm %s646_s3, %s323_s9  ;;  %s243_s11 = int_to_ptr.vmem [resolvable:$true] %s242_s11 }
  0x36   : > { %v188_v1 = vand.u32 127, %v187_v0  ;;  %v321_v20 = vld [vmem:[%s645_s2] ss:$0 sm:$0xff]  ;;  %s229_s22 = scalar_lea.sflag [#allocation4], %s590_s29  ;;  %s404_s26 = scalar_lea.vmem %s243_s11, 128 }
  0x37   : > { %p405_p11 = scmp.ne.s32.totalorder %s243_s11, %s404_s26  ;;  %p657_p12 = scmp.ne.s32.totalorder %s651_s24, 0 }
  0x38   : > { %vm189_vm0 = vcmp.lt.s32.totalorder %v188_v1, 32  ;;  %s471_s27 = smov [#allocation5]  }
  0x39   : > { %v190_v3 = vsel %vm189_vm0, %v186_v2, 0.0  ;;  %p406_p13 = pnand %p405_p11, %p657_p12  ;;  %s408_s28 = sshll.u32 %s471_s27, 4  ;;  %s409_s28 = int_to_ptr.vmem [resolvable:$false] %s408_s28 }
  0x3a   : > { %191 = vadd.xlane.f32.xlu0 %v190_v3  ;;  %s410_s16 = scalar_lea.vmem %s409_s28, 256  ;;  %p411_p3 = scmp.lt.s32.totalorder %s243_s11, %s409_s28 }
  0x3b   : > { %p407_p1 = pneg %p406_p13  ;;  %p412_p5 = scmp.lt.s32.totalorder %s410_s16, %s404_s26 }
  0x3d   : > { %p413_p8 = por %p412_p5, %p411_p3 }
  0x3f   : > { %p414_p10 = pnand %p413_p8, %p407_p1 }
  0xc3   : > { %v192_v4 = vpop.xlane.xlu0 %191 }
  0xc4   : > { %v193_v5 = vmul.f32 0.03125, %v192_v4 }
  0xc6   : > { %v194_v6 = vsub.f32 %v190_v3, %v193_v5 }
  0xc8   : > { %v195_v7 = vmul.f32 %v194_v6, %v194_v6 }
  0xca   : > { %v196_v8 = vsel %vm189_vm0, %v195_v7, 0.0 }
  0xcb   : > { %197 = vadd.xlane.f32.xlu0 %v196_v8 }
 0x154   : > { %v198_v9 = vpop.xlane.xlu0 %197 }
 0x155   : > { %v199_v10 = vmul.f32 0.032258064, %v198_v9 }
 0x157   : > { %372 = vrsqrt.f32 %v199_v10  ;;  %vm202_vm1 = vcmp.eq.f32.partialorder %v199_v10, inf  ;;  %v205_v13 = vand.u32 2147483648, %v199_v10  ;;  %vm204_vm2 = vcmp.eq.f32.partialorder %v199_v10, 0.0 }
 0x164   : > { %v373_v11 = vpop.eup %372 }
 0x165   : > { %v201_v12 = vmul.f32 %v373_v11, %v199_v10 }
 0x167   : > { %v203_v14 = vsel %vm202_vm1, %v199_v10, %v201_v12 }
 0x168   : > { %v206_v15 = vsel %vm204_vm2, %v205_v13, %v203_v14 }
 0x169   : > { %v207_v16 = vadd.f32 1e-06, %v206_v15 }
 0x16b   : > { %374 = vrcp.f32 %v207_v16 }
 0x178   : > { %v375_v17 = vpop.eup %374 }
 0x179   : > { %v212_v19 = vmul.f32 %v375_v17, %v194_v6 }
 0x17b   : > { %v219_v21 = vmul.f32 %v320_v18, %v212_v19 }
 0x17d   : > { %v226_v22 = vadd.f32 %v321_v20, %v219_v21 }
 0x17f   : > { %227 = vst [vmem:[%s185_s10] sm:$0xff] %v226_v22 }
 0x180   : > { %417 = shalt.err (!%p414_p10)
}
 0x181   : > { %s418_s30 = scalar_lea.hbm %s240_s20, 128  ;;  %s422_s7 = scalar_lea.hbm %s646_s3, 256 }
 0x182   : > { %p419_p2 = scmp.ne.s32.totalorder %s240_s20, %s418_s30  ;;  %p423_p7 = scmp.lt.s32.totalorder %s240_s20, %s646_s3 }
 0x183   : > { %p424_p0 = scmp.lt.s32.totalorder %s422_s7, %s418_s30 }
 0x184   : > { %p420_p4 = pnand %p419_p2, %p657_p12 }
 0x185   : > { %p425_p6 = por %p424_p0, %p423_p7 }
 0x186   : > { %p421_p9 = pneg %p420_p4 }
 0x188   : > { %p426_p11 = pnand %p425_p6, %p421_p9 }
 0x18a   : > { %429 = shalt.err (!%p426_p11)
}
 0x18b   : > { %328 = dma.vmem_to_hbm [thread:$0]  (%p657_p12), %s243_s11, 128, %s240_s20, %s229_s22  }
 0x18c PF: > { %s254_s6 = sand.u32 1, %s456_s12   ;;  %p658_p13 = scmp.ne.s32.totalorder %s652_s25, 0 }
 0x18d   : > { %p659_p1 = scmp.ge.s32.totalorder %s468_s15, 2  ;;  %s255_s8 = scalar_lea.sflag [#allocation4], %s254_s6 }
 0x18f   : > { %p335_p3 = pnand %p659_p1, %p658_p13 }
 0x191   : > { %p336_p5 = pneg %p335_p3 }
 0x193   : > { %451 = dma.done.wait (%p336_p5), %s255_s8, 128  }
 0x194   : > { %453 = vsyncadd (%p336_p5), %s255_s8, 4294967168  ;;  %p16_p8 = scmp.ge.s32.totalorder %s517_s18, 4   ;;  %s660_s12 = smov %s460_s13 }
 0x195   : > { %s661_s13 = smov %s464_s14  ;;  %s662_s14 = smov %s529_s21 }
 0x196   : > { %s663_s15 = smov %s517_s18  ;;  %18 = sbr.rel (!%p16_p8) target bundleno = 5 (0x5), region = 77 }
 0x19b   :  { %260 = vsyncpa [#allocation3], 1 }
 0x19c   :  { %262 = vsyncpa [#allocation3 + $0x1], 1 }
 0x19d   :  { %263 = vsyncpa [#allocation4], 1 }
 0x19e   :  { %265 = vsyncpa [#allocation4 + $0x1], 1 }

</bundles_post_ra>
